<compile_context>
chip_gen: v7x
topology: tpu7x:2x2x1
jax: 0.10.0
libtpu: 0.0.40
codegen_flags: <defaults>
</compile_context>

<pallas_src>
import functools

import jax
import jax.numpy as jnp
from jax.experimental import pallas as pl
from jax.experimental.pallas import tpu as pltpu


def _linear_stack_kernel(x_ref, wb_ref, o_ref, *, in_f, use_mxu):
    if use_mxu:
        # Large K: one MXU contraction (f32 accumulate) beats unrolled VPU FMAs.
        y = jnp.dot(
            x_ref[...], wb_ref[:in_f, :], preferred_element_type=jnp.float32
        )
        y = y + wb_ref[in_f : in_f + 1, :]
    else:
        # Tiny K (K=2 here): pure VPU broadcast-accumulate, no MXU involved.
        #   (tb, 1) * (1, 3*out_f) broadcasts -> (tb, 3*out_f), summed over K.
        acc = x_ref[:, 0:1] * wb_ref[0:1, :]
        for k in range(1, in_f):
            acc = acc + x_ref[:, k : k + 1] * wb_ref[k : k + 1, :]
        y = acc + wb_ref[in_f : in_f + 1, :]
    # torch.stack((y,y,y), dim=1).view(B,-1) == [y | y | y] along columns; that
    # replication is already baked into wb, and transpose(1,0).permute(1,0) is
    # an identity round-trip -> one full-width store.
    o_ref[...] = y.astype(o_ref.dtype)


def _pack_params(weight, bias, *, repeats):
    """weight: (out_f, in_f), bias: (out_f,) -> (in_f+1, repeats*out_f) f32."""
    out_f = weight.shape[0]
    wb = jnp.concatenate(
        [weight.T.astype(jnp.float32), bias.reshape(1, out_f).astype(jnp.float32)],
        axis=0,
    )
    return jnp.tile(wb, (1, repeats))


def make_linear_stack(weight, bias, *, repeats=3, tb=8192):
    """Returns a jitted fn x:(B, in_f) -> (B, repeats*out_f).

    Weight/bias packing (concat + tile + cast) happens ONCE here, not per call.
    """
    out_f, in_f = weight.shape
    wb = _pack_params(weight, bias, repeats=repeats)  # (in_f+1, repeats*out_f)
    rep_out = repeats * out_f
    use_mxu = in_f >= 16

    kernel = functools.partial(_linear_stack_kernel, in_f=in_f, use_mxu=use_mxu)

    @jax.jit
    def linear_stack(x):
        B = x.shape[0]
        tb_eff = min(tb, B)  # tb_eff == B for small batches (single block)
        grid = (pl.cdiv(B, tb_eff),)

        # Lane-padded VMEM footprint: (tb,128)f32 for x and out, double-buffered
        # ~= tb * 2 KiB; 32 MiB comfortably covers tb=8192 on every chip
        # (raise together with tb if you grow the tile further).
        return pl.pallas_call(
            kernel,
            out_shape=jax.ShapeDtypeStruct((B, rep_out), jnp.float32),
            grid_spec=pltpu.PrefetchScalarGridSpec(
                num_scalar_prefetch=0,
                grid=grid,
                in_specs=[
                    pl.BlockSpec((tb_eff, in_f), lambda i: (i, 0)),
                    pl.BlockSpec((in_f + 1, rep_out), lambda i: (0, 0)),
                ],
                out_specs=pl.BlockSpec((tb_eff, rep_out), lambda i: (i, 0)),
            ),
            compiler_params=pltpu.CompilerParams(
                dimension_semantics=("parallel",),  # shards batch across TCs
                vmem_limit_bytes=32 * 1024 * 1024,
            ),
        )(x, wb)

    return linear_stack


if __name__ == "__main__":
    key = jax.random.PRNGKey(0)
    kx, kw, kb = jax.random.split(key, 3)

    # Module-implied shapes: Linear(2, 3), input x of shape (2, 2).
    x = jax.random.normal(kx, (2, 2), dtype=jnp.float32)
    weight = jax.random.normal(kw, (3, 2), dtype=jnp.float32) * 0.5
    bias = jax.random.normal(kb, (3,), dtype=jnp.float32) * 0.1

    linear_stack = make_linear_stack(weight, bias)
    out = jax.block_until_ready(linear_stack(x))

    # Reference check in plain JAX (mirrors the PyTorch forward exactly).
    y_ref = x @ weight.T + bias                      # Linear
    ref = jnp.stack((y_ref, y_ref, y_ref), axis=1)   # stack dim=1
    ref = ref.reshape(ref.shape[0], -1)              # view(B, -1)
    ref = ref.T.T                                    # transpose(1,0).permute(1,0)
    assert out.shape == (2, 9)
    assert jnp.allclose(out, ref, atol=1e-5, rtol=1e-5), (out, ref)
    print("KERNEL_OK")
</pallas_src>

<mosaic_0001>
module attributes {stable_mosaic.version = 11 : i64} {
  func.func @_linear_stack_kernel(%arg0: i32, %arg1: memref<2x2xf32, #tpu.memory_space<vmem>>, %arg2: memref<3x9xf32, #tpu.memory_space<vmem>>, %arg3: memref<2x9xf32, #tpu.memory_space<vmem>>) attributes {dimension_semantics = [#tpu.dimension_semantics<parallel>], iteration_bounds = array<i64: 1>, scalar_prefetch = 0 : i64, scratch_operands = 0 : i64, tpu.core_type = #tpu.core_type<tc>, window_params = [{transform_indices = @transform_0, window_bounds = array<i64: 2, 2>}, {pipeline_mode = #tpu.pipeline_mode<synchronous>, transform_indices = @transform_1, window_bounds = array<i64: 3, 9>}, {transform_indices = @transform_2, window_bounds = array<i64: 2, 9>}]} {
    %c0 = arith.constant 0 : index
    %c0_0 = arith.constant 0 : index
    %0 = vector.load %arg1[%c0, %c0_0] : memref<2x2xf32, #tpu.memory_space<vmem>>, vector<2x1xf32>
    %c0_1 = arith.constant 0 : index
    %c0_2 = arith.constant 0 : index
    %1 = vector.load %arg2[%c0_1, %c0_2] : memref<3x9xf32, #tpu.memory_space<vmem>>, vector<1x9xf32>
    %2 = vector.broadcast %0 : vector<2x1xf32> to vector<2x9xf32>
    %3 = vector.broadcast %1 : vector<1x9xf32> to vector<2x9xf32>
    %4 = arith.mulf %2, %3 : vector<2x9xf32>
    %c0_3 = arith.constant 0 : index
    %c1 = arith.constant 1 : index
    %5 = vector.load %arg1[%c0_3, %c1] : memref<2x2xf32, #tpu.memory_space<vmem>>, vector<2x1xf32>
    %c1_4 = arith.constant 1 : index
    %c0_5 = arith.constant 0 : index
    %6 = vector.load %arg2[%c1_4, %c0_5] : memref<3x9xf32, #tpu.memory_space<vmem>>, vector<1x9xf32>
    %7 = vector.broadcast %5 : vector<2x1xf32> to vector<2x9xf32>
    %8 = vector.broadcast %6 : vector<1x9xf32> to vector<2x9xf32>
    %9 = arith.mulf %7, %8 : vector<2x9xf32>
    %10 = arith.addf %4, %9 : vector<2x9xf32>
    %c2 = arith.constant 2 : index
    %c0_6 = arith.constant 0 : index
    %11 = vector.load %arg2[%c2, %c0_6] : memref<3x9xf32, #tpu.memory_space<vmem>>, vector<1x9xf32>
    %12 = vector.broadcast %11 : vector<1x9xf32> to vector<2x9xf32>
    %13 = arith.addf %10, %12 : vector<2x9xf32>
    %c0_7 = arith.constant 0 : index
    %c0_8 = arith.constant 0 : index
    %14 = vector.load %arg3[%c0_7, %c0_8] : memref<2x9xf32, #tpu.memory_space<vmem>>, vector<2x9xf32>
    tpu.vector_store %arg3[%c0_7, %c0_8], %13 {strides = array<i32>} : memref<2x9xf32, #tpu.memory_space<vmem>>, vector<2x9xf32>,
    return
  }
  func.func @transform_0(%arg0: i32) -> (i32, i32) {
    %c0_i32 = arith.constant 0 : i32
    %c0_i32_0 = arith.constant 0 : i32
    return %arg0, %c0_i32 : i32, i32
  }
  func.func @transform_1(%arg0: i32) -> (i32, i32) {
    %c0_i32 = arith.constant 0 : i32
    %c0_i32_0 = arith.constant 0 : i32
    %c0_i32_1 = arith.constant 0 : i32
    return %c0_i32, %c0_i32_0 : i32, i32
  }
  func.func @transform_2(%arg0: i32) -> (i32, i32) {
    %c0_i32 = arith.constant 0 : i32
    %c0_i32_0 = arith.constant 0 : i32
    return %arg0, %c0_i32 : i32, i32
  }
}

</mosaic_0001>

<bundles_post_ra>
// kernel: linear_stack.1
= control target key start
LH: loop header
LB: loop body
LE: loop exit
PB: predicated region body
PF: predicated region fallthrough
CT: control target
= control target key end

     0   :  { %7 = vsyncpa [#allocation3], 0  ;;  %s221_s0 = inlined_call_operand.hbm [shape: f32[2,2], index: 0, kind: input, shape index: {}]   ;;  %s222_s1 = inlined_call_operand.hbm [shape: f32[3,9], index: 1, kind: input, shape index: {}]   ;;  %s223_s2 = inlined_call_operand.hbm [shape: f32[2,9], index: 2, kind: output, shape index: {}]  }
   0x1   :  { %8 = vsyncpa [#allocation6], 0 }
   0x2   :  { %9 = vsyncpa [#allocation4], 0  ;;  %s165_s9 = smov [#allocation2]   ;;  %s166_s11 = smov [#allocation5]  }
   0x3   :  { %s16_s10 = sshll.u32 %s165_s9, 4  ;;  %s26_s12 = sshll.u32 %s166_s11, 4  ;;  %s17_s10 = int_to_ptr.vmem [resolvable:$true] %s16_s10  ;;  %s27_s12 = int_to_ptr.vmem [resolvable:$true] %s26_s12 }
   0x4   :  { %s93_s15 = scalar_lea.hbm %s221_s0, 32 }
   0x5   :  { %p94_p0 = scmp.ne.s32.totalorder %s221_s0, %s93_s15  ;;  %p97_p1 = scmp.lt.u32.totalorder %s93_s15, %s221_s0 }
   0x7   :  { %p99_p2 = pnand %p97_p1, %p94_p0 }
   0x9   :  { %102 = shalt.err (!%p99_p2)
}
   0xa   :  { %s103_s20 = scalar_lea.vmem %s17_s10, 32  ;;  %p108_p4 = scmp.lt.s32.totalorder %s17_s10, %s17_s10 }
   0xb   :  { %p104_p3 = scmp.ne.s32.totalorder %s17_s10, %s103_s20  ;;  %p109_p5 = scmp.lt.s32.totalorder %s103_s20, %s103_s20 }
   0xd   :  { %p110_p6 = por %p109_p5, %p108_p4 }
   0xf   :  { %p111_p7 = pnand %p110_p6, %p104_p3 }
  0x11   :  { %114 = shalt.err (!%p111_p7)
}
  0x12   :  { %19 = dma.hbm_to_vmem [thread:$0]  %s221_s0, 32, %s17_s10, [#allocation3]  }
  0x13   :  { %s115_s25 = scalar_lea.hbm %s222_s1, 64 }
  0x14   :  { %p116_p8 = scmp.ne.s32.totalorder %s222_s1, %s115_s25  ;;  %p119_p9 = scmp.lt.u32.totalorder %s115_s25, %s222_s1 }
  0x16   :  { %p121_p10 = pnand %p119_p9, %p116_p8 }
  0x18   :  { %124 = shalt.err (!%p121_p10)
}
  0x19   :  { %s125_s30 = scalar_lea.vmem %s27_s12, 64  ;;  %p130_p12 = scmp.lt.s32.totalorder %s27_s12, %s27_s12 }
  0x1a   :  { %p126_p11 = scmp.ne.s32.totalorder %s27_s12, %s125_s30  ;;  %p131_p13 = scmp.lt.s32.totalorder %s125_s30, %s125_s30 }
  0x1c   :  { %p132_p0 = por %p131_p13, %p130_p12 }
  0x1e   :  { %p133_p1 = pnand %p132_p0, %p126_p11 }
  0x20   :  { %136 = shalt.err (!%p133_p1)
}
  0x21   :  { %29 = dma.hbm_to_vmem [thread:$0]  %s222_s1, 64, %s27_s12, [#allocation6]  }
  0x22   :  { %159 = dma.done.wait [#allocation3], 32  }
  0x23   :  { %160 = vsyncadd [#allocation3], 4294967264 }
  0x24   :  { %161 = dma.done.wait [#allocation6], 64  }
  0x25   :  { %162 = vsyncadd [#allocation6], 4294967232  ;;  %v167_v0 = vmov 0   ;;  %v36_v1 = vld [vmem:[#allocation2] sm:$0x3]  ;;  %v168_v2 = vmov 1  }
  0x26   :  { %91 = vset.pattern.permute.xlu0 %v167_v0  ;;  %v83_v4 = vld [vmem:[#allocation5] ss:$0 sm:$0xff]  ;;  %v84_v5 = vld [vmem:[#allocation5 + $0x1] ss:$0 sm:$0xff]  ;;  %v85_v9 = vld [vmem:[#allocation5 + $0x2] ss:$0 sm:$0xff] }
  0x27   :  { %40 = vperm.xlu0 %91, %v36_v1   ;;  %s169_s4 = smov [#allocation7]   ;;  %vm65_vm0 = vcmask 66560  }
  0x28   :  { %s73_s1 = sshll.u32 %s169_s4, 4  ;;  %s74_s1 = int_to_ptr.vmem [resolvable:$true] %s73_s1 }
  0x29   :  { %s137_s5 = scalar_lea.vmem %s74_s1, 32  ;;  %p142_p3 = scmp.lt.s32.totalorder %s74_s1, %s74_s1 }
  0x2a   :  { %p138_p2 = scmp.ne.s32.totalorder %s74_s1, %s137_s5  ;;  %p143_p4 = scmp.lt.s32.totalorder %s137_s5, %s137_s5 }
  0x2b   :  { %92 = vset.pattern.permute.xlu0 %v168_v2 }
  0x2c   :  { %50 = vperm.xlu0 %92, %v36_v1   ;;  %p144_p5 = por %p143_p4, %p142_p3 }
  0x2e   :  { %p145_p6 = pnand %p144_p5, %p138_p2 }
  0xa6   :  { %v41_v3 = vpop.permute.xlu0 %40 }
  0xa7   :  { %v47_v7 = vmul.f32 %v83_v4, %v41_v3 }
  0xab   :  { %v51_v6 = vpop.permute.xlu0 %50 }
  0xac   :  { %v57_v8 = vmul.f32 %v84_v5, %v51_v6 }
  0xae   :  { %v58_v10 = vadd.f32 %v57_v8, %v47_v7 }
  0xb0   :  { %v64_v11 = vadd.f32 %v85_v9, %v58_v10 }
  0xb2   :  { %66 = vst.msk [vmem:[#allocation7] sm:$0x3] %vm65_vm0, %v64_v11 }
  0xb3   :  { %148 = shalt.err (!%p145_p6)
}
  0xb4   :  { %s149_s8 = scalar_lea.hbm %s223_s2, 32 }
  0xb5   :  { %p150_p7 = scmp.ne.s32.totalorder %s223_s2, %s149_s8  ;;  %p153_p8 = scmp.lt.u32.totalorder %s149_s8, %s223_s2 }
  0xb7   :  { %p155_p9 = pnand %p153_p8, %p150_p7 }
  0xb9   :  { %158 = shalt.err (!%p155_p9)
}
  0xba   :  { %76 = dma.vmem_to_hbm [thread:$0]  %s74_s1, 32, %s223_s2, [#allocation4]  }
  0xbb   :  { %163 = dma.done.wait [#allocation4], 32  }
  0xbc   :  { %164 = vsyncadd [#allocation4], 4294967264 }
  0xbd   :  { %80 = vsyncpa [#allocation3], 1 }
  0xbe   :  { %81 = vsyncpa [#allocation6], 1 }
  0xbf   :  { %82 = vsyncpa [#allocation4], 1 }

</bundles_post_ra>
